<compile_context>
chip_gen: v5e
topology: v5e:2x2
jax: 0.10.0
libtpu: 0.0.40
codegen_flags: <defaults>
</compile_context>

<pallas_src>
import functools

import jax
import jax.numpy as jnp
import numpy as np
from jax.experimental import pallas as pl
from jax.experimental.pallas import tpu as pltpu


def _norm_reg_l1_kernel(feat_ref, ind_ref, mask_ref, tgt_ref, out_ref, *, hw_tile):
    # feat_ref: (1, C, tHW) f32   native NCHW view, current HW chunk
    # ind_ref:  (1, 1, K)  i32    (resident across the HW-chunk axis)
    # mask_ref: (1, 1, K)  f32
    # tgt_ref:  (1, C, K)  f32    (target transposed so K is on lanes)
    # out_ref:  (1, 1, 1)  f32    per-(batch, chunk) numerator partial sum
    feat = feat_ref[0]        # (C, tHW)
    ind_row = ind_ref[0]      # (1, K) int32
    m = mask_ref[0]           # (1, K)
    tgt = tgt_ref[0]          # (C, K)

    j = pl.program_id(1)
    base = j * hw_tile
    local_ind = ind_row - base                                        # (1, K)
    in_chunk = jnp.logical_and(local_ind >= 0, local_ind < hw_tile)   # (1, K)

    # Per-chunk one-hot from a (tHW, 1) iota broadcast against (1, K) indices
    # (no (HW, K) iota temporary). Indices outside the chunk yield zero cols.
    hw_iota = jax.lax.broadcasted_iota(jnp.int32, (hw_tile, 1), 0)
    onehot_t = (hw_iota == local_ind).astype(feat.dtype)              # (tHW, K)

    # Exact f32 gather in the native layout:
    #   pred_T[c, k] = feat[c, ind[k]]  for ind[k] inside this chunk, else 0.
    pred_t = jnp.dot(feat, onehot_t,
                     precision=jax.lax.Precision.HIGHEST,
                     preferred_element_type=jnp.float32)              # (C, K)

    p = pred_t / (tgt + 1e-4)
    # target is replaced by ones; mask is 0/1 so |p*m - m| == m * |p - 1|.
    # Only keypoints whose index lands in this chunk contribute here; every
    # keypoint is counted by exactly one chunk, so the per-chunk partials sum
    # to the full numerator.
    m_eff = m * in_chunk.astype(jnp.float32)                          # (1, K)
    diff = m_eff * jnp.abs(p - 1.0)                                   # (C, K)

    out_ref[...] = jnp.sum(diff).reshape(1, 1, 1)


def _pick_hw_tile(hw):
    # Largest lane-aligned chunk that divides HW (256-multiples feed the
    # v6e/v7x MXU contraction nicely); fall back to the full extent.
    for t in (512, 256, 128):
        if hw % t == 0:
            return t
    # TODO(synk): pad HW to a multiple of 128 for non-conforming spatial sizes.
    return hw


def norm_reg_l1_loss(output, mask, ind, target):
    """output: (B, C, H, W) float32 (NCHW, as in PyTorch)
       mask:   (B, K)       float (0/1)
       ind:    (B, K)       int32 indices into H*W
       target: (B, K, C)    float32
       returns scalar float32 loss."""
    B, C, H, W = output.shape
    K = ind.shape[1]
    HW = H * W
    t_hw = _pick_hw_tile(HW)
    n_chunks = HW // t_hw

    # Native layout, no transpose (pure reshape -> no HBM copy).
    feat = output.reshape(B, C, HW).astype(jnp.float32)
    ind3 = ind.astype(jnp.int32).reshape(B, 1, K)
    mask_f = mask.astype(jnp.float32)
    mask3 = mask_f.reshape(B, 1, K)
    tgt_t = jnp.transpose(target.astype(jnp.float32), (0, 2, 1))      # (B, C, K)

    kernel = functools.partial(_norm_reg_l1_kernel, hw_tile=t_hw)

    num = pl.pallas_call(
        kernel,
        out_shape=jax.ShapeDtypeStruct((B * n_chunks, 1, 1), jnp.float32),
        grid=(B, n_chunks),
        in_specs=[
            pl.BlockSpec((1, C, t_hw), lambda b, j: (b, 0, j)),
            pl.BlockSpec((1, 1, K), lambda b, j: (b, 0, 0)),
            pl.BlockSpec((1, 1, K), lambda b, j: (b, 0, 0)),
            pl.BlockSpec((1, C, K), lambda b, j: (b, 0, 0)),
        ],
        out_specs=pl.BlockSpec((1, 1, 1),
                               lambda b, j: (b * n_chunks + j, 0, 0)),
        compiler_params=pltpu.CompilerParams(
            dimension_semantics=("parallel", "parallel"),
            vmem_limit_bytes=32 << 20),
    )(feat, ind3, mask3, tgt_t)

    # Denominator needs no kernel work: sum of the (B,K,C)-expanded mask.
    den = jnp.sum(mask_f) * C
    return jnp.sum(num) / (den + 1e-4)


def _reference(output, mask, ind, target):
    B, C, H, W = output.shape
    feat = jnp.transpose(output, (0, 2, 3, 1)).reshape(B, H * W, C)
    pred = jnp.take_along_axis(feat, ind[:, :, None].astype(jnp.int32), axis=1)
    m = jnp.broadcast_to(mask[:, :, None].astype(jnp.float32), pred.shape)
    p = pred / (target + 1e-4)
    loss = jnp.sum(jnp.abs(p * m - 1.0 * m))
    return loss / (jnp.sum(m) + 1e-4)


if __name__ == "__main__":
    B, C, H, W, K = 2, 4, 16, 16, 8
    key = jax.random.PRNGKey(0)
    k1, k2, k3, k4 = jax.random.split(key, 4)

    output = jax.random.normal(k1, (B, C, H, W), dtype=jnp.float32)
    ind = jax.random.randint(k2, (B, K), 0, H * W, dtype=jnp.int32)
    mask = (jax.random.uniform(k3, (B, K)) > 0.3).astype(jnp.float32)
    target = jax.random.uniform(k4, (B, K, C), dtype=jnp.float32) + 0.5

    loss = norm_reg_l1_loss(output, mask, ind, target)
    loss = jax.block_until_ready(loss)

    ref = jax.block_until_ready(_reference(output, mask, ind, target))
    assert np.allclose(np.asarray(loss), np.asarray(ref), rtol=1e-5, atol=1e-5), \
        (float(loss), float(ref))

    print("KERNEL_OK")
</pallas_src>

<mosaic_0001>
module attributes {stable_mosaic.version = 11 : i64} {
  func.func @_norm_reg_l1_kernel(%arg0: i32, %arg1: i32, %arg2: memref<1x4x256xf32, #tpu.memory_space<vmem>>, %arg3: memref<1x1x8xi32, #tpu.memory_space<vmem>>, %arg4: memref<1x1x8xf32, #tpu.memory_space<vmem>>, %arg5: memref<1x4x8xf32, #tpu.memory_space<vmem>>, %arg6: memref<1x1x1xf32, #tpu.memory_space<vmem>>) attributes {dimension_semantics = [#tpu.dimension_semantics<parallel>, #tpu.dimension_semantics<parallel>], iteration_bounds = array<i64: 2, 1>, scalar_prefetch = 0 : i64, scratch_operands = 0 : i64, tpu.core_type = #tpu.core_type<tc>, window_params = [{transform_indices = @transform_0, window_bounds = array<i64: 1, 4, 256>}, {transform_indices = @transform_1, window_bounds = array<i64: 1, 1, 8>}, {transform_indices = @transform_2, window_bounds = array<i64: 1, 1, 8>}, {transform_indices = @transform_3, window_bounds = array<i64: 1, 4, 8>}, {transform_indices = @transform_4, window_bounds = array<i64: 1, 1, 1>}]} {
    %c0 = arith.constant 0 : index
    %c0_0 = arith.constant 0 : index
    %c0_1 = arith.constant 0 : index
    %0 = vector.load %arg2[%c0, %c0_0, %c0_1] : memref<1x4x256xf32, #tpu.memory_space<vmem>>, vector<1x4x256xf32>
    %1 = vector.shape_cast %0 : vector<1x4x256xf32> to vector<4x256xf32>
    %c0_2 = arith.constant 0 : index
    %c0_3 = arith.constant 0 : index
    %c0_4 = arith.constant 0 : index
    %2 = vector.load %arg3[%c0_2, %c0_3, %c0_4] : memref<1x1x8xi32, #tpu.memory_space<vmem>>, vector<1x1x8xi32>
    %3 = vector.shape_cast %2 : vector<1x1x8xi32> to vector<1x8xi32>
    %c0_5 = arith.constant 0 : index
    %c0_6 = arith.constant 0 : index
    %c0_7 = arith.constant 0 : index
    %4 = vector.load %arg4[%c0_5, %c0_6, %c0_7] : memref<1x1x8xf32, #tpu.memory_space<vmem>>, vector<1x1x8xf32>
    %5 = vector.shape_cast %4 : vector<1x1x8xf32> to vector<1x8xf32>
    %c0_8 = arith.constant 0 : index
    %c0_9 = arith.constant 0 : index
    %c0_10 = arith.constant 0 : index
    %6 = vector.load %arg5[%c0_8, %c0_9, %c0_10] : memref<1x4x8xf32, #tpu.memory_space<vmem>>, vector<1x4x8xf32>
    %7 = vector.shape_cast %6 : vector<1x4x8xf32> to vector<4x8xf32>
    %c256_i32 = arith.constant 256 : i32
    %8 = arith.muli %arg1, %c256_i32 : i32
    %9 = vector.broadcast %8 : i32 to vector<1x8xi32>
    %10 = arith.subi %3, %9 : vector<1x8xi32>
    %c0_i32 = arith.constant 0 : i32
    %11 = vector.broadcast %c0_i32 : i32 to vector<1x8xi32>
    %12 = arith.cmpi sge, %10, %11 : vector<1x8xi32>
    %c256_i32_11 = arith.constant 256 : i32
    %13 = vector.broadcast %c256_i32_11 : i32 to vector<1x8xi32>
    %14 = arith.cmpi slt, %10, %13 : vector<1x8xi32>
    %15 = arith.andi %12, %14 : vector<1x8xi1>
    %16 = tpu.iota {dimensions = array<i32: 0>} : vector<256x1xi32>
    %17 = vector.broadcast %16 : vector<256x1xi32> to vector<256x8xi32>
    %18 = vector.broadcast %10 : vector<1x8xi32> to vector<256x8xi32>
    %19 = arith.cmpi eq, %17, %18 : vector<256x8xi32>
    %20 = arith.extui %19 : vector<256x8xi1> to vector<256x8xi32>
    %21 = arith.sitofp %20 : vector<256x8xi32> to vector<256x8xf32>
    %cst = arith.constant dense<0.000000e+00> : vector<4x8xf32>
    %22 = tpu.matmul %1, %21, %cst {dimension_numbers = #tpu.dot_dimension_numbers<[1], [0], [0], [1], [0, 0, 1, 1], [], []>, precision = #tpu.contract_precision<fp32>} : vector<4x256xf32>, vector<256x8xf32>, vector<4x8xf32> -> vector<4x8xf32>
    %cst_12 = arith.constant 9.99999974E-5 : f32
    %23 = vector.broadcast %cst_12 : f32 to vector<4x8xf32>
    %24 = arith.addf %7, %23 : vector<4x8xf32>
    %25 = arith.divf %22, %24 : vector<4x8xf32>
    %26 = arith.extui %15 : vector<1x8xi1> to vector<1x8xi32>
    %27 = arith.sitofp %26 : vector<1x8xi32> to vector<1x8xf32>
    %28 = arith.mulf %5, %27 : vector<1x8xf32>
    %cst_13 = arith.constant 1.000000e+00 : f32
    %29 = vector.broadcast %cst_13 : f32 to vector<4x8xf32>
    %30 = arith.subf %25, %29 : vector<4x8xf32>
    %31 = math.absf %30 : vector<4x8xf32>
    %32 = vector.broadcast %28 : vector<1x8xf32> to vector<4x8xf32>
    %33 = arith.mulf %32, %31 : vector<4x8xf32>
    %34 = vector.shape_cast %33 : vector<4x8xf32> to vector<1x4x8xf32>
    %cst_14 = arith.constant dense<0.000000e+00> : vector<1xf32>
    %35 = vector.multi_reduction <add>, %34, %cst_14 [1, 2] : vector<1x4x8xf32> to vector<1xf32>
    %36 = vector.shape_cast %35 : vector<1xf32> to vector<1x1x1xf32>
    %37 = vector.extract %36[0, 0, 0] : f32 from vector<1x1x1xf32>
    %38 = vector.broadcast %37 : f32 to vector<1x1x1xf32>
    %c0_15 = arith.constant 0 : index
    %c0_16 = arith.constant 0 : index
    %c0_17 = arith.constant 0 : index
    %39 = vector.load %arg6[%c0_15, %c0_16, %c0_17] : memref<1x1x1xf32, #tpu.memory_space<vmem>>, vector<1x1x1xf32>
    tpu.vector_store %arg6[%c0_15, %c0_16, %c0_17], %38 {strides = array<i32>} : memref<1x1x1xf32, #tpu.memory_space<vmem>>, vector<1x1x1xf32>,
    return
  }
  func.func @transform_0(%arg0: i32, %arg1: i32) -> (i32, i32, i32) {
    %c0_i32 = arith.constant 0 : i32
    %c0_i32_0 = arith.constant 0 : i32
    return %arg0, %c0_i32, %arg1 : i32, i32, i32
  }
  func.func @transform_1(%arg0: i32, %arg1: i32) -> (i32, i32, i32) {
    %c0_i32 = arith.constant 0 : i32
    %c0_i32_0 = arith.constant 0 : i32
    %c0_i32_1 = arith.constant 0 : i32
    return %arg0, %c0_i32, %c0_i32_0 : i32, i32, i32
  }
  func.func @transform_2(%arg0: i32, %arg1: i32) -> (i32, i32, i32) {
    %c0_i32 = arith.constant 0 : i32
    %c0_i32_0 = arith.constant 0 : i32
    %c0_i32_1 = arith.constant 0 : i32
    return %arg0, %c0_i32, %c0_i32_0 : i32, i32, i32
  }
  func.func @transform_3(%arg0: i32, %arg1: i32) -> (i32, i32, i32) {
    %c0_i32 = arith.constant 0 : i32
    %c0_i32_0 = arith.constant 0 : i32
    %c0_i32_1 = arith.constant 0 : i32
    return %arg0, %c0_i32, %c0_i32_0 : i32, i32, i32
  }
  func.func @transform_4(%arg0: i32, %arg1: i32) -> (i32, i32, i32) {
    %c1_i32 = arith.constant 1 : i32
    %0 = arith.muli %arg0, %c1_i32 : i32
    %1 = arith.addi %0, %arg1 : i32
    %c0_i32 = arith.constant 0 : i32
    %c0_i32_0 = arith.constant 0 : i32
    %c0_i32_1 = arith.constant 0 : i32
    return %1, %c0_i32, %c0_i32_0 : i32, i32, i32
  }
}

</mosaic_0001>

<bundles_post_ra>
// kernel: tpu_custom_call.1
= control target key start
LH: loop header
LB: loop body
LE: loop exit
PB: predicated region body
PF: predicated region fallthrough
CT: control target
= control target key end

     0   :  { %9 = vsyncpa [#allocation3], 0  ;;  %s2933_s0 = inlined_call_operand.hbm [shape: f32[2,4,256], index: 0, kind: input, shape index: {}]   ;;  %s2934_s1 = inlined_call_operand.hbm [shape: s32[2,1,8], index: 1, kind: input, shape index: {}]   ;;  %s2935_s2 = inlined_call_operand.hbm [shape: f32[2,1,8], index: 2, kind: input, shape index: {}]   ;;  %s2936_s3 = inlined_call_operand.hbm [shape: f32[2,4,8], index: 3, kind: input, shape index: {}]   ;;  %s2937_s4 = inlined_call_operand.vmem [shape: f32[2,1,1], index: 4, kind: output, shape index: {}]  }
   0x1   :  { %11 = vsyncpa [#allocation3 + $0x1], 0 }
   0x2   :  { %12 = vsyncpa [#allocation5], 0 }
   0x3   :  { %14 = vsyncpa [#allocation5 + $0x1], 0 }
   0x4   :  { %15 = vsyncpa [#allocation8], 0 }
   0x5   :  { %17 = vsyncpa [#allocation8 + $0x1], 0  ;;  %s1769_s15 = smov 0   ;;  %s1771_s16 = smov 0  }
   0x6   :  { %s1773_s17 = smov 0   ;;  %s1775_s18 = smov 0  }
   0x7   :  { %s1777_s19 = smov 0   ;;  %s1779_s20 = smov 0  }
   0x8 LB: > { %s2938_s21 = sadd.s32 4294967295, %s1740_s20   ;;  %s35_s22 = sadd.s32 1, %s1736_s19  ;;  %s1740_s20 = sphi %s1779_s20, %s23_s20   ;;  %s1736_s19 = sphi %s1777_s19, %s3043_s19   ;;  %s1732_s18 = sphi %s1775_s18, %s3042_s18   ;;  %s1728_s17 = sphi %s1773_s17, %s3041_s17   ;;  %s1724_s16 = sphi %s1771_s16, %s3040_s16   ;;  %s1720_s15 = sphi %s1769_s15, %s3039_s15  }
   0x9   : > { %p37_p0 = scmp.ge.s32.totalorder %s35_s22, 2  ;;  %s44_s23 = sadd.s32 1, %s1728_s17 }
   0xa   : > { %p51_p1 = scmp.ne.s32.totalorder %s1728_s17, %s1724_s16  ;;  %p52_p2 = scmp.eq.s32.totalorder %s1740_s20, 0 }
   0xb   : > { %s3045_s22 = smov (%p37_p0, %s35_s22), 0  ;;  %p57_p4 = scmp.ne.s32.totalorder %s1724_s16, %s1720_s15 }
   0xc   : > { %p53_p3 = por %p52_p2, %p51_p1  ;;  %s39_s24 = ssub.s32 %s1736_s19, %s3045_s22 }
   0xd   : > { %p58_p5 = scmp.eq.s32.totalorder %s2938_s21, 0  ;;  %p42_p6 = scmp.eq.s32.totalorder %s39_s24, 0 }
   0xe   : > { %p1508_p8 = scmp.lt.s32.totalorder %s1740_s20, 2  ;;  %s1819_s27 = sand.u32 1, %s1728_s17  }
   0xf   : > { %p1810_p7 = por %p58_p5, %p57_p4  ;;  %s209_s29 = sand.u32 1, %s1740_s20  }
  0x10   : > { %s1816_s26 = scalar_select %p42_p6, %s1728_s17, %s44_s23  }
  0x11   : > { %p1821_p9 = pnand %p1508_p8, %p53_p3  ;;  %s215_s6 = scalar_lea.hbm %s2934_s1, %s1736_s19 }
  0x12   : > { %s212_s7 = scalar_lea.vmem [#allocation4], %s1819_s27  ;;  %s217_s9 = sshll.u32 %s215_s6, 4  ;;  %s218_s9 = int_to_ptr.hbm [resolvable:$true] %s217_s9 }
  0x13   : > { %s219_s8 = sshll.u32 %s212_s7, 4  ;;  %p1349_p10 = scmp.ge.s32.totalorder %s1740_s20, 1  ;;  %s220_s8 = int_to_ptr.vmem [resolvable:$true] %s219_s8 }
  0x14   : > { %s210_s10 = scalar_lea.sflag [#allocation5], %s209_s29  ;;  %p260_p11 = scmp.lt.s32.totalorder %s1740_s20, 3 }
  0x15   : > { %1501 = dma.hbm_to_vmem [thread:$0]  (!%p1821_p9), %s218_s9, 16, %s220_s8, %s210_s10  }
  0x16   : > { %p1835_p12 = pnand %p1349_p10, %p260_p11  ;;  %s1344_s12 = sshll.u32 %s1819_s27, 3 }
  0x17   : > { %s1484_s13 = sshll.u32 %s1736_s19, 3  ;;  %s191_s24 = scalar_lea.vmem [#allocation2], %s1344_s12 }
  0x18   : > { %s198_s23 = scalar_lea.hbm %s2933_s0, %s1484_s13  ;;  %s202_s30 = sshll.u32 %s191_s24, 4  ;;  %s203_s30 = int_to_ptr.vmem [resolvable:$true] %s202_s30 }
  0x19   : > { %s200_s5 = sshll.u32 %s198_s23, 4  ;;  %s188_s29 = scalar_lea.sflag [#allocation3], %s1819_s27  ;;  %s201_s5 = int_to_ptr.hbm [resolvable:$true] %s200_s5 }
  0x1a   : > { %1498 = dma.hbm_to_vmem [thread:$0]  (!%p1821_p9), %s201_s5, 128, %s203_s30, %s188_s29  }
  0x1b   : > { %s232_s8 = scalar_lea.hbm %s2935_s2, %s1736_s19  ;;  %s229_s9 = scalar_lea.vmem [#allocation6], %s1819_s27 }
  0x1c   : > { %s236_s21 = sshll.u32 %s229_s9, 4  ;;  %s234_s14 = sshll.u32 %s232_s8, 4  ;;  %s237_s21 = int_to_ptr.vmem [resolvable:$true] %s236_s21  ;;  %s235_s14 = int_to_ptr.hbm [resolvable:$true] %s234_s14 }
  0x1d   : > { %1504 = dma.hbm_to_vmem [thread:$0]  (!%p1821_p9), %s235_s14, 16, %s237_s21, %s210_s10  }
  0x1e   : > { %s1347_s12 = sshll.u32 %s1819_s27, 2  ;;  %s1348_s13 = sshll.u32 %s1736_s19, 2 }
  0x1f   : > { %s251_s24 = scalar_lea.hbm %s2936_s3, %s1348_s13  ;;  %s247_s5 = scalar_lea.vmem [#allocation7], %s1347_s12 }
  0x20   : > { %s253_s30 = sshll.u32 %s251_s24, 4  ;;  %s255_s29 = sshll.u32 %s247_s5, 4  ;;  %s254_s30 = int_to_ptr.hbm [resolvable:$true] %s253_s30  ;;  %s256_s29 = int_to_ptr.vmem [resolvable:$true] %s255_s29 }
  0x21   : > { %s244_s6 = scalar_lea.sflag [#allocation8], %s1819_s27  ;;  %264 = sbr.rel (%p1835_p12) target bundleno = 488 (0x1e8), region = 36 }
  0x22   : > { %1507 = dma.hbm_to_vmem [thread:$0]  (!%p1821_p9), %s254_s30, 64, %s256_s29, %s244_s6  }
  0x26   : > { %s1865_s21 = sand.u32 1, %s1724_s16  }
  0x27   : > { %s1350_s10 = sshll.u32 %s1865_s21, 3  ;;  %s267_s7 = scalar_lea.sflag [#allocation3], %s1865_s21 }
  0x28   : > { %s270_s8 = scalar_lea.vmem [#allocation2], %s1350_s10 }
  0x29   : > { %1707 = dma.done.wait (%p1810_p7), %s267_s7, 128  }
  0x2a   : > { %1709 = vsyncadd (%p1810_p7), %s267_s7, 4294967168  ;;  %s2987_s27 = sadd.s32 4294967295, %s1740_s20   ;;  %s279_s9 = scalar_lea.vmem [#allocation4], %s1865_s21 }
  0x2b   : > { %s276_s28 = sand.u32 1, %s2987_s27  }
  0x2c   : > { %s277_s11 = scalar_lea.sflag [#allocation5], %s276_s28 }
  0x2d   : > { %1711 = dma.done.wait (%p1810_p7), %s277_s11, 32  }
  0x2e   : > { %1713 = vsyncadd (%p1810_p7), %s277_s11, 4294967264  ;;  %s1351_s14 = sshll.u32 %s1865_s21, 2  ;;  %s288_s12 = scalar_lea.vmem [#allocation6], %s1865_s21 }
  0x2f   : > { %s295_s13 = scalar_lea.sflag [#allocation8], %s1865_s21  ;;  %s1883_s15 = scalar_lea.vmem [#allocation7], %s1351_s14 }
  0x30   : > { %1715 = dma.done.wait (%p1810_p7), %s295_s13, 64  }
  0x31   : > { %1717 = vsyncadd (%p1810_p7), %s295_s13, 4294967232  ;;  %v352_v0 = vlaneseq  ;;  %v342_v11 = vld [vmem:[%s270_s8] sm:$0xff]  ;;  %v1920_v12 = vld [vmem:[%s279_s9] ss:$0 sm:$0xff]  ;;  %v2962_v20 = vmov 1.0   ;;  %v2971_v21 = vmov 0.0  }
  0x32   : > { %483 = vst [vmem:[#allocation1] ss:$2 sm:$0xff] %v342_v11  ;;  %p338_p13 = scmp.lt.s32.totalorder %s1732_s18, 1 }
  0x33   : > { %v1889_v1 = vshrl.u32 %v352_v0, 7 }
  0x34   : > { %s3047_s18 = smov (!%p338_p13, %s1732_s18), 1 }
  0x35   : > { %v1892_v2 = vadd.s32 120, %v1889_v1  ;;  %v1895_v3 = vadd.s32 112, %v1889_v1  ;;  %v1898_v4 = vadd.s32 104, %v1889_v1  ;;  %v1901_v5 = vadd.s32 96, %v1889_v1  ;;  %s340_s24 = scalar_lea.vmem %s2937_s4, %s3047_s18 }
  0x36   : > { %v1904_v6 = vadd.s32 88, %v1889_v1  ;;  %v1907_v7 = vadd.s32 80, %v1889_v1  ;;  %v1910_v8 = vadd.s32 72, %v1889_v1  ;;  %v1913_v9 = vadd.s32 64, %v1889_v1 }
  0x37   : > { %v1916_v10 = vadd.s32 56, %v1889_v1  ;;  %v1923_v13 = vadd.s32 48, %v1889_v1  ;;  %v1926_v14 = vadd.s32 40, %v1889_v1  ;;  %v1929_v15 = vadd.s32 32, %v1889_v1 }
  0x38   : > { %v1932_v16 = vadd.s32 24, %v1889_v1  ;;  %v1935_v17 = vadd.s32 16, %v1889_v1  ;;  %v1938_v18 = vadd.s32 8, %v1889_v1  ;;  %v1941_v19 = vadd.s32 248, %v1889_v1 }
  0x39   : > { %vm401_vm0 = vcmp.eq.s32.totalorder %v1892_v2, %v1920_v12  ;;  %vm400_vm1 = vcmp.eq.s32.totalorder %v1895_v3, %v1920_v12  ;;  %vm399_vm2 = vcmp.eq.s32.totalorder %v1898_v4, %v1920_v12  ;;  %vm398_vm3 = vcmp.eq.s32.totalorder %v1901_v5, %v1920_v12 }
  0x3a   : > { %1384 = vmatpush.msk.msra.mxu0 %vm401_vm0, %v2962_v20  ;;  %v1367_v22 = vsel %vm401_vm0, 1.0, %v2971_v21  ;;  %v1366_v23 = vsel %vm400_vm1, 1.0, %v2971_v21  ;;  %1400 = vmatpush.msk.msra.mxu3 %vm401_vm0, %v2962_v20  ;;  %vm397_vm4 = vcmp.eq.s32.totalorder %v1904_v6, %v1920_v12  ;;  %v1365_v24 = vsel %vm399_vm2, 1.0, %v2971_v21 }
  0x3b   : > { %v1973_v25 = vsub.f32 %v1367_v22, %v1367_v22  ;;  %v1975_v26 = vsub.f32 %v1366_v23, %v1366_v23  ;;  %v1977_v27 = vsub.f32 %v1365_v24, %v1365_v24  ;;  %vm396_vm5 = vcmp.eq.s32.totalorder %v1907_v7, %v1920_v12 }
  0x3c   : > { %1385 = vmatpush.msk.msra.mxu0 %vm400_vm1, %v2962_v20  ;;  %1401 = vmatpush.msk.msra.mxu3 %vm400_vm1, %v2962_v20  ;;  %v1364_v28 = vsel %vm398_vm3, 1.0, %v2971_v21  ;;  %vm2968_vm6 = vcmp.eq.s32.totalorder %v1910_v8, %v1920_v12  ;;  %v1363_v29 = vsel %vm397_vm4, 1.0, %v2971_v21  ;;  %v2000_v30 = vadd.s32 240, %v1889_v1 }
  0x3d   : > { %632 = vmatpush.msra.mxu2 %v1973_v25  ;;  %v531_v31 = vand.u32 4294901760, %v1973_v25  ;;  %v537_v32 = vand.u32 4294901760, %v1975_v26  ;;  %v2005_v33 = vsub.f32 %v1364_v28, %v1364_v28  ;;  %v543_v34 = vand.u32 4294901760, %v1977_v27 }
  0x3e   : > { %1386 = vmatpush.msk.msra.mxu0 %vm399_vm2, %v2962_v20  ;;  %1402 = vmatpush.msk.msra.mxu3 %vm399_vm2, %v2962_v20  ;;  %v2016_v35 = vsub.f32 %v1363_v29, %v1363_v29  ;;  %vm2965_vm7 = vcmp.eq.s32.totalorder %v1913_v9, %v1920_v12  ;;  %v1362_v36 = vsel %vm396_vm5, 1.0, %v2971_v21  ;;  %v1361_v37 = vsel %vm2968_vm6, 1.0, %v2971_v21 }
  0x3f   : > { %635 = vmatpush.msra.mxu2 %v1975_v26  ;;  %v532_v38 = vsub.f32 %v1973_v25, %v531_v31  ;;  %v538_v39 = vsub.f32 %v1975_v26, %v537_v32  ;;  %v544_v40 = vsub.f32 %v1977_v27, %v543_v34  ;;  %v2959_v41 = vand.u32 4294901760, %v2005_v33 }
  0x40   : > { %1387 = vmatpush.msk.msra.mxu0 %vm398_vm3, %v2962_v20  ;;  %1403 = vmatpush.msk.msra.mxu3 %vm398_vm3, %v2962_v20  ;;  %v2047_v42 = vsub.f32 %v1362_v36, %v1362_v36  ;;  %vm2940_vm8 = vcmp.eq.s32.totalorder %v1916_v10, %v1920_v12  ;;  %v2957_v43 = vand.u32 4294901760, %v2016_v35  ;;  %v2052_v44 = vsub.f32 %v1361_v37, %v1361_v37 }
  0x41   : > { %v533_v45 = vand.u32 4294901760, %v532_v38  ;;  %638 = vmatpush.msra.mxu2 %v1977_v27  ;;  %v539_v46 = vand.u32 4294901760, %v538_v39  ;;  %v550_v47 = vsub.f32 %v2005_v33, %v2959_v41  ;;  %vm2939_vm9 = vcmp.eq.s32.totalorder %v1923_v13, %v1920_v12 }
  0x42   : > { %1388 = vmatpush.msk.msra.mxu0 %vm397_vm4, %v2962_v20  ;;  %v545_v48 = vand.u32 4294901760, %v544_v40  ;;  %1404 = vmatpush.msk.msra.mxu3 %vm397_vm4, %v2962_v20  ;;  %v556_v49 = vsub.f32 %v2016_v35, %v2957_v43  ;;  %v2955_v50 = vand.u32 4294901760, %v2047_v42  ;;  %v1360_v51 = vsel %vm2965_vm7, 1.0, %v2971_v21 }
  0x43   : > { %534 = vmatpush.msra.mxu1 %v533_v45  ;;  %641 = vmatpush.msra.mxu2 %v2005_v33  ;;  %v2077_v52 = vsub.f32 %v1360_v51, %v1360_v51  ;;  %vm2947_vm10 = vcmp.eq.s32.totalorder %v1926_v14, %v1920_v12  ;;  %v2954_v53 = vand.u32 4294901760, %v2052_v44  ;;  %v1359_v54 = vsel %vm2940_vm8, 1.0, %v2971_v21 }
  0x44   : > { %1389 = vmatpush.msk.msra.mxu0 %vm396_vm5, %v2962_v20  ;;  %v551_v55 = vand.u32 4294901760, %v550_v47  ;;  %v557_v56 = vand.u32 4294901760, %v556_v49  ;;  %1405 = vmatpush.msk.msra.mxu3 %vm396_vm5, %v2962_v20  ;;  %v562_v57 = vsub.f32 %v2047_v42, %v2955_v50  ;;  %v2097_v58 = vsub.f32 %v1359_v54, %v1359_v54 }
  0x45   : > { %540 = vmatpush.msra.mxu1 %v539_v46  ;;  %644 = vmatpush.msra.mxu2 %v2016_v35  ;;  %v568_v59 = vsub.f32 %v2052_v44, %v2954_v53  ;;  %vm2942_vm11 = vcmp.eq.s32.totalorder %v1929_v15, %v1920_v12  ;;  %v2950_v60 = vand.u32 4294901760, %v2077_v52  ;;  %v1358_v61 = vsel %vm2939_vm9, 1.0, %v2971_v21 }
  0x46   : > { %1390 = vmatpush.msk.msra.mxu0 %vm2968_vm6, %v2962_v20  ;;  %1406 = vmatpush.msk.msra.mxu3 %vm2968_vm6, %v2962_v20  ;;  %v2118_v62 = vsub.f32 %v1358_v61, %v1358_v61  ;;  %vm2964_vm12 = vcmp.eq.s32.totalorder %v1932_v16, %v1920_v12  ;;  %v2949_v63 = vand.u32 4294901760, %v2097_v58  ;;  %v1357_v0 = vsel %vm2947_vm10, 1.0, %v2971_v21 }
  0x47   : > { %546 = vmatpush.msra.mxu1 %v545_v48  ;;  %647 = vmatpush.msra.mxu2 %v2047_v42  ;;  %v563_v11 = vand.u32 4294901760, %v562_v57  ;;  %v574_v22 = vsub.f32 %v2077_v52, %v2950_v60  ;;  %v2131_v23 = vsub.f32 %v1357_v0, %v1357_v0  ;;  %vm2951_vm13 = vcmp.eq.s32.totalorder %v1935_v17, %v1920_v12 }
  0x48   : > { %1391 = vmatpush.msk.msra.mxu0 %vm2965_vm7, %v2962_v20  ;;  %1407 = vmatpush.msk.msra.mxu3 %vm2965_vm7, %v2962_v20  ;;  %v2146_v24 = vsub.f32 %v2097_v58, %v2949_v63  ;;  %v2948_v28 = vand.u32 4294901760, %v2118_v62  ;;  %v1356_v29 = vsel %vm2942_vm11, 1.0, %v2971_v21  ;;  %vm2956_vm14 = vcmp.eq.s32.totalorder %v1938_v18, %v1920_v12 }
  0x49   : > { %552 = vmatpush.msra.mxu1 %v551_v55  ;;  %650 = vmatpush.msra.mxu2 %v2052_v44  ;;  %v569_v36 = vand.u32 4294901760, %v568_v59  ;;  %v2156_v37 = vsub.f32 %v1356_v29, %v1356_v29  ;;  %v2946_v38 = vand.u32 4294901760, %v2131_v23  ;;  %v1355_v39 = vsel %vm2964_vm12, 1.0, %v2971_v21 }
  0x4a   : > { %1392 = vmatpush.msk.msra.mxu0 %vm2940_vm8, %v2962_v20  ;;  %v575_v40 = vand.u32 4294901760, %v574_v22  ;;  %1408 = vmatpush.msk.msra.mxu3 %vm2940_vm8, %v2962_v20  ;;  %v2174_v45 = vsub.f32 %v2118_v62, %v2948_v28  ;;  %v2176_v46 = vsub.f32 %v1355_v39, %v1355_v39  ;;  %vm2960_vm15 = vcmp.eq.s32.totalorder %v1889_v1, %v1920_v12 }
  0x4b   : > { %558 = vmatpush.msra.mxu1 %v557_v56  ;;  %653 = vmatpush.msra.mxu2 %v2077_v52  ;;  %v2184_v47 = vsub.f32 %v2131_v23, %v2946_v38  ;;  %v2945_v48 = vand.u32 4294901760, %v2156_v37  ;;  %v1354_v49 = vsel %vm2951_vm13, 1.0, %v2971_v21  ;;  %v1353_v51 = vsel %vm2956_vm14, 1.0, %v2971_v21 }
  0x4c   : > { %1393 = vmatpush.msk.msra.mxu0 %vm2939_vm9, %v2962_v20  ;;  %v581_v54 = vand.u32 4294901760, %v2146_v24  ;;  %1409 = vmatpush.msk.msra.mxu3 %vm2939_vm9, %v2962_v20  ;;  %v2204_v55 = vsub.f32 %v1354_v49, %v1354_v49  ;;  %v2941_v56 = vand.u32 4294901760, %v2176_v46  ;;  %v2207_v57 = vsub.f32 %v1353_v51, %v1353_v51 }
  0x4d   : > { %564 = vmatpush.msra.mxu1 %v563_v11  ;;  %656 = vmatpush.msra.mxu2 %v2097_v58  ;;  %v587_v59 = vand.u32 4294901760, %v2174_v45  ;;  %v2214_v61 = vsub.f32 %v2156_v37, %v2945_v48  ;;  %v1352_v0 = vsel %vm2960_vm15, 1.0, %v2971_v21  ;;  %vm2973_vm9 = vcmp.eq.s32.totalorder %v1941_v19, %v1920_v12 }
  0x4e   : > { %1394 = vmatpush.msk.msra.mxu0 %vm2947_vm10, %v2962_v20  ;;  %1410 = vmatpush.msk.msra.mxu3 %vm2947_vm10, %v2962_v20  ;;  %v2233_v11 = vsub.f32 %v2176_v46, %v2941_v56  ;;  %v2943_v22 = vand.u32 4294901760, %v2204_v55  ;;  %v2236_v24 = vsub.f32 %v1352_v0, %v1352_v0  ;;  %v2944_v29 = vand.u32 4294901760, %v2207_v57 }
  0x4f   : > { %570 = vmatpush.msra.mxu1 %v569_v36  ;;  %659 = vmatpush.msra.mxu2 %v2118_v62  ;;  %v593_v39 = vand.u32 4294901760, %v2184_v47  ;;  %vm2979_vm8 = vcmp.eq.s32.totalorder %v2000_v30, %v1920_v12  ;;  %v1383_v45 = vsel %vm2973_vm9, 1.0, %v2971_v21  ;;  %v2248_v49 = vadd.s32 232, %v1889_v1 }
  0x50   : > { %1395 = vmatpush.msk.msra.mxu0 %vm2942_vm11, %v2962_v20  ;;  %1411 = vmatpush.msk.msra.mxu3 %vm2942_vm11, %v2962_v20  ;;  %v599_v36 = vand.u32 4294901760, %v2214_v61  ;;  %v2262_v47 = vsub.f32 %v2204_v55, %v2943_v22  ;;  %v2267_v51 = vsub.f32 %v2207_v57, %v2944_v29  ;;  %v2269_v0 = vsub.f32 %v1383_v45, %v1383_v45 }
  0x51   : > { %576 = vmatpush.msra.mxu1 %v575_v40  ;;  %662 = vmatpush.msra.mxu2 %v2131_v23  ;;  %v2953_v56 = vand.u32 4294901760, %v2236_v24  ;;  %vm415_vm11 = vcmp.eq.s32.totalorder %v2248_v49, %v1920_v12  ;;  %v1382_v61 = vsel %vm2979_vm8, 1.0, %v2971_v21  ;;  %v2280_v22 = vadd.s32 224, %v1889_v1 }
  0x52   : > { %1396 = vmatpush.msk.msra.mxu0 %vm2964_vm12, %v2962_v20  ;;  %1412 = vmatpush.msk.msra.mxu3 %vm2964_vm12, %v2962_v20  ;;  %v605_v40 = vand.u32 4294901760, %v2233_v11  ;;  %v611_v45 = vand.u32 4294901760, %v2262_v47  ;;  %v2952_v29 = vand.u32 4294901760, %v2269_v0  ;;  %v2293_v48 = vsub.f32 %v1382_v61, %v1382_v61 }
  0x53   : > { %582 = vmatpush.msra.mxu1 %v581_v54  ;;  %665 = vmatpush.msra.mxu2 %v2156_v37  ;;  %vm414_vm10 = vcmp.eq.s32.totalorder %v2280_v22, %v1920_v12  ;;  %v1381_v28 = vsel %vm415_vm11, 1.0, %v2971_v21  ;;  %v2304_v11 = vadd.s32 216, %v1889_v1  ;;  %v2328_v60 = vsub.f32 %v2236_v24, %v2953_v56 }
  0x54   : > { %1397 = vmatpush.msk.msra.mxu0 %vm2951_vm13, %v2962_v20  ;;  %1413 = vmatpush.msk.msra.mxu3 %vm2951_vm13, %v2962_v20  ;;  %v873_v54 = vsub.f32 %v2269_v0, %v2952_v29  ;;  %v2958_v47 = vand.u32 4294901760, %v2293_v48  ;;  %v2318_v61 = vsub.f32 %v1381_v28, %v1381_v28  ;;  %v1380_v63 = vsel %vm414_vm10, 1.0, %v2971_v21 }
  0x55   : > { %588 = vmatpush.msra.mxu1 %v587_v59  ;;  %668 = vmatpush.msra.mxu2 %v2176_v46  ;;  %vm413_vm13 = vcmp.eq.s32.totalorder %v2304_v11, %v1920_v12  ;;  %v2332_v29 = vsub.f32 %v1380_v63, %v1380_v63  ;;  %v2335_v28 = vadd.s32 208, %v1889_v1  ;;  %v2360_v43 = vadd.s32 200, %v1889_v1 }
  0x56   : > { %1398 = vmatpush.msk.msra.mxu0 %vm2956_vm14, %v2962_v20  ;;  %1414 = vmatpush.msk.msra.mxu3 %vm2956_vm14, %v2962_v20  ;;  %v874_v59 = vand.u32 4294901760, %v873_v54  ;;  %v879_v56 = vsub.f32 %v2293_v48, %v2958_v47  ;;  %v2961_v63 = vand.u32 4294901760, %v2318_v61  ;;  %v1379_v53 = vsel %vm413_vm13, 1.0, %v2971_v21 }
  0x57   : > { %594 = vmatpush.msra.mxu1 %v593_v39  ;;  %671 = vmatpush.msra.mxu2 %v2204_v55  ;;  %v2967_v50 = vand.u32 4294901760, %v2332_v29  ;;  %vm412_vm14 = vcmp.eq.s32.totalorder %v2335_v28, %v1920_v12  ;;  %v2357_v54 = vsub.f32 %v1379_v53, %v1379_v53  ;;  %v2378_v41 = vadd.s32 192, %v1889_v1 }
  0x58   : > { %1399 = vmatpush.msk.msra.mxu0 %vm2960_vm15, %v2962_v20  ;;  %1415 = vmatpush.msk.msra.mxu3 %vm2960_vm15, %v2962_v20  ;;  %v880_v39 = vand.u32 4294901760, %v879_v56  ;;  %v885_v47 = vsub.f32 %v2318_v61, %v2961_v63  ;;  %v1378_v53 = vsel %vm412_vm14, 1.0, %v2971_v21  ;;  %vm411_vm15 = vcmp.eq.s32.totalorder %v2360_v43, %v1920_v12  ;;  %v345_v43 = vld [vmem:[%s1883_s15] sm:$0xf] }
  0x59   : > { %600 = vmatpush.msra.mxu1 %v599_v36  ;;  %v891_v56 = vsub.f32 %v2332_v29, %v2967_v50  ;;  %v2966_v38 = vand.u32 4294901760, %v2357_v54  ;;  %v2388_v63 = vsub.f32 %v1378_v53, %v1378_v53  ;;  %674 = vmatpush.msra.mxu2 %v2207_v57  ;;  %vm2969_vm12 = vcmp.eq.s32.totalorder %v2378_v41, %v1920_v12 }
  0x5a   : > { %726 = vmatpush.msrb.mxu0 %v531_v31  ;;  %875 = vmatpush.msrb.mxu3 %v874_v59  ;;  %v886_v20 = vand.u32 4294901760, %v885_v47  ;;  %v1377_v25 = vsel %vm411_vm15, 1.0, %v2971_v21  ;;  %v2398_v31 = vadd.s32 184, %v1889_v1  ;;  %v1376_v26 = vsel %vm2969_vm12, 1.0, %v2971_v21 }
  0x5b   : > { %2988 = vst [vmem:[#allocation12_spill] sm:$0xff] %v2388_v63  ;;  %606 = vmatpush.msra.mxu1 %v605_v40  ;;  %v892_v36 = vand.u32 4294901760, %v891_v56  ;;  %v897_v47 = vsub.f32 %v2357_v54, %v2966_v38  ;;  %v2970_v59 = vand.u32 4294901760, %v2388_v63  ;;  %v2406_v53 = vsub.f32 %v1377_v25, %v1377_v25  ;;  %677 = vmatpush.msra.mxu2 %v2236_v24 }
  0x5c   : > { %730 = vmatpush.msrb.mxu0 %v537_v32  ;;  %881 = vmatpush.msrb.mxu3 %v880_v39  ;;  %vm409_vm7 = vcmp.eq.s32.totalorder %v2398_v31, %v1920_v12  ;;  %v2416_v32 = vadd.s32 176, %v1889_v1  ;;  %v2419_v40 = vadd.s32 168, %v1889_v1  ;;  %v623_v39 = vand.u32 4294901760, %v2328_v60 }
  0x5d   : > { %2989 = vst [vmem:[#allocation13_spill] sm:$0xff] %v2406_v53  ;;  %612 = vmatpush.msra.mxu1 %v611_v45  ;;  %v903_v56 = vsub.f32 %v2388_v63, %v2970_v59  ;;  %v2974_v25 = vand.u32 4294901760, %v2406_v53  ;;  %v2428_v38 = vsub.f32 %v1376_v26, %v1376_v26  ;;  %v2990_v50 = vmov 1.0   ;;  %v484_v63 = vld.sshfl [vmem:[#allocation1] sm:$0xff pattern:$0x75316420] }
  0x5e   : > { %734 = vmatpush.msrb.mxu0 %v543_v34  ;;  %1432 = vmatpush.msk.msrb.mxu2 %vm2973_vm9, %v2990_v50  ;;  %vm408_vm6 = vcmp.eq.s32.totalorder %v2416_v32, %v1920_v12  ;;  %v1375_v27 = vsel %vm409_vm7, 1.0, %v2971_v21  ;;  %vm407_vm12 = vcmp.eq.s32.totalorder %v2419_v40, %v1920_v12  ;;  %v2443_v34 = vadd.s32 160, %v1889_v1 }
  0x5f   : > { %887 = vmatpush.msrb.mxu3 %v886_v20  ;;  %v2991_v60 = vand.u32 4294901760, %v2267_v51  ;;  %v2992_v45 = vand.u32 4294901760, %v2005_v33  ;;  %v898_v20 = vand.u32 4294901760, %v897_v47  ;;  %v909_v26 = vsub.f32 %v2406_v53, %v2974_v25 }
  0x60   : > { %v2981_v59 = vand.u32 4294901760, %v2428_v38  ;;  %v2453_v21 = vsub.f32 %v1375_v27, %v1375_v27  ;;  %1433 = vmatpush.msk.msrb.mxu2 %vm2979_vm8, %v2990_v50  ;;  %v2993_v51 = vmov 0.0   ;;  %vm406_vm9 = vcmp.eq.s32.totalorder %v2443_v34, %v1920_v12 }
  0x61   : > { %618 = vmatpush.msra.mxu1 %v2991_v60  ;;  %738 = vmatpush.msrb.mxu0 %v2992_v45  ;;  %v1374_v33 = vsel %vm408_vm6, 1.0, %v2993_v51  ;;  %v1373_v47 = vsel %vm407_vm12, 1.0, %v2993_v51  ;;  %v2470_v27 = vadd.s32 152, %v1889_v1  ;;  %v2994_v60 = vand.u32 4294901760, %v2016_v35 }
  0x62   : > { %893 = vmatpush.msrb.mxu3 %v892_v36  ;;  %v904_v36 = vand.u32 4294901760, %v903_v56  ;;  %v915_v45 = vsub.f32 %v2428_v38, %v2981_v59  ;;  %v2980_v25 = vand.u32 4294901760, %v2453_v21  ;;  %v2478_v53 = vsub.f32 %v1374_v33, %v1374_v33  ;;  %1434 = vmatpush.msk.msrb.mxu2 %vm415_vm11, %v2990_v50 }
  0x63   : > { %624 = vmatpush.msra.mxu1 %v623_v39  ;;  %742 = vmatpush.msrb.mxu0 %v2994_v60  ;;  %v2488_v35 = vsub.f32 %v1373_v47, %v1373_v47  ;;  %vm405_vm8 = vcmp.eq.s32.totalorder %v2470_v27, %v1920_v12  ;;  %v1372_v39 = vsel %vm406_vm9, 1.0, %v2993_v51  ;;  %v2995_v56 = vand.u32 4294901760, %v2047_v42 }
  0x64   : > { %899 = vmatpush.msrb.mxu3 %v898_v20  ;;  %v910_v2 = vand.u32 4294901760, %v909_v26  ;;  %v921_v33 = vsub.f32 %v2453_v21, %v2980_v25  ;;  %v2982_v47 = vand.u32 4294901760, %v2478_v53  ;;  %v2502_v60 = vsub.f32 %v1372_v39, %v1372_v39  ;;  %1435 = vmatpush.msk.msrb.mxu2 %vm414_vm10, %v2990_v50 }
  0x65   : > { %1416 = vmatpush.msk.msrb.mxu1 %vm401_vm0, %v2990_v50  ;;  %746 = vmatpush.msrb.mxu0 %v2995_v56  ;;  %v2513_v20 = vand.u32 4294901760, %v484_v63  ;;  %v2516_v26 = vadd.s32 144, %v1889_v1  ;;  %v1371_v39 = vsel %vm405_vm8, 1.0, %v2993_v51  ;;  %v2996_v3 = vand.u32 4294901760, %v2052_v44 }
  0x66   : > { %905 = vmatpush.msrb.mxu3 %v904_v36  ;;  %v916_v56 = vand.u32 4294901760, %v915_v45  ;;  %v927_v25 = vsub.f32 %v2478_v53, %v2982_v47  ;;  %v938_v59 = vand.u32 4294901760, %v2502_v60  ;;  %v2528_v42 = vsub.f32 %v1371_v39, %v1371_v39  ;;  %1436 = vmatpush.msk.msrb.mxu2 %vm413_vm13, %v2990_v50 }
  0x67   : > { %1417 = vmatpush.msk.msrb.mxu1 %vm400_vm1, %v2990_v50  ;;  %750 = vmatpush.msrb.mxu0 %v2996_v3  ;;  %vm404_vm0 = vcmp.eq.s32.totalorder %v2516_v26, %v1920_v12  ;;  %v2541_v44 = vadd.s32 136, %v1889_v1  ;;  %v2997_v36 = vand.u32 4294901760, %v2077_v52  ;;  %v922_v45 = vand.u32 4294901760, %v921_v33 }
  0x68   : > { %911 = vmatpush.msrb.mxu3 %v910_v2  ;;  %v2998_v39 = vand.u32 4294901760, %v2488_v35  ;;  %v944_v3 = vand.u32 4294901760, %v2528_v42  ;;  %v1370_v47 = vsel %vm404_vm0, 1.0, %v2993_v51  ;;  %1437 = vmatpush.msk.msrb.mxu2 %vm412_vm14, %v2990_v50  ;;  %v2562_v52 = vsub.f32 %v484_v63, %v2513_v20 }
  0x69   : > { %1418 = vmatpush.msk.msrb.mxu1 %vm399_vm2, %v2990_v50  ;;  %754 = vmatpush.msrb.mxu0 %v2997_v36  ;;  %vm403_vm1 = vcmp.eq.s32.totalorder %v2541_v44, %v1920_v12  ;;  %v2566_v2 = vsub.f32 %v1370_v47, %v1370_v47  ;;  %v2999_v33 = vand.u32 4294901760, %v2097_v58  ;;  %v928_v36 = vand.u32 4294901760, %v927_v25 }
  0x6a   : > { %v933_v4 = vsub.f32 %v2488_v35, %v2998_v39  ;;  %917 = vmatpush.msrb.mxu3 %v916_v56  ;;  %v939_v5 = vsub.f32 %v2502_v60, %v938_v59  ;;  %v2574_v39 = vadd.s32 128, %v1889_v1  ;;  %v1369_v63 = vsel %vm403_vm1, 1.0, %v2993_v51  ;;  %1438 = vmatpush.msk.msrb.mxu2 %vm411_vm15, %v2990_v50 }
  0x6b   : > { %1419 = vmatpush.msk.msrb.mxu1 %vm398_vm3, %v2990_v50  ;;  %758 = vmatpush.msrb.mxu0 %v2999_v33  ;;  %v950_v58 = vand.u32 4294901760, %v2566_v2  ;;  %v2589_v25 = vsub.f32 %v1369_v63, %v1369_v63  ;;  %v3000_v47 = vand.u32 4294901760, %v2118_v62  ;;  %v945_v33 = vsub.f32 %v2528_v42, %v944_v3  ;;  %v485_v63 = vld.sshfl [vmem:[#allocation1 + $0x8] sm:$0xff pattern:$0x75316420] }
  0x6c   : > { %923 = vmatpush.msrb.mxu3 %v922_v45  ;;  %v934_v56 = vand.u32 4294901760, %v933_v4  ;;  %vm2983_vm2 = vcmp.eq.s32.totalorder %v2574_v39, %v1920_v12  ;;  %vm3001_vm3 = vcmp.eq.s32.totalorder %v2378_v41, %v1920_v12  ;;  %v522_v6 = vand.u32 4294901760, %v2562_v52  ;;  %680 = vmatmul.f32.vlgmr.msra.gmra.mxu2 %v2562_v52 }
  0x6d   : > { %1420 = vmatpush.msk.msrb.mxu1 %vm397_vm4, %v2990_v50  ;;  %762 = vmatpush.msrb.mxu0 %v3000_v47  ;;  %v1368_v62 = vsel %vm2983_vm2, 1.0, %v2993_v51  ;;  %v3002_v45 = vand.u32 4294901760, %v2131_v23  ;;  %v940_v4 = vand.u32 4294901760, %v939_v5  ;;  %v951_v7 = vsub.f32 %v2566_v2, %v950_v58 }
  0x6e   : > { %1439 = vmatpush.msk.msrb.mxu2 %vm3001_vm3, %v2990_v50  ;;  %929 = vmatpush.msrb.mxu3 %v928_v36  ;;  %vm3003_vm4 = vcmp.eq.s32.totalorder %v1910_v8, %v1920_v12  ;;  %v956_v23 = vand.u32 4294901760, %v2589_v25  ;;  %v3004_v36 = vand.u32 4294901760, %v2156_v37  ;;  %v946_v5 = vand.u32 4294901760, %v945_v33 }
  0x6f   : > { %1421 = vmatpush.msk.msrb.mxu1 %vm396_vm5, %v2990_v50  ;;  %766 = vmatpush.msrb.mxu0 %v3002_v45  ;;  %v2627_v47 = vsub.f32 %v1368_v62, %v1368_v62  ;;  %vm3005_vm5 = vcmp.eq.s32.totalorder %v1913_v9, %v1920_v12  ;;  %v523_v8 = vsub.f32 %v2562_v52, %v522_v6  ;;  %v2638_v45 = vand.u32 4294901760, %v485_v63 }
  0x70   : > { %1440 = vmatpush.msk.msrb.mxu2 %vm409_vm7, %v2990_v50  ;;  %935 = vmatpush.msrb.mxu3 %v934_v56  ;;  %v3006_v37 = vand.u32 4294901760, %v2176_v46  ;;  %v952_v56 = vand.u32 4294901760, %v951_v7  ;;  %vm3007_vm3 = vcmp.eq.s32.totalorder %v1916_v10, %v1920_v12  ;;  %v957_v9 = vsub.f32 %v2589_v25, %v956_v23 }
  0x71   : > { %1422 = vmatpush.msk.msrb.mxu1 %vm3003_vm4, %v2990_v50  ;;  %770 = vmatpush.msrb.mxu0 %v3004_v36  ;;  %v3008_v33 = vand.u32 4294901760, %v2204_v55  ;;  %v962_v46 = vand.u32 4294901760, %v2627_v47  ;;  %vm3009_vm4 = vcmp.eq.s32.totalorder %v1923_v13, %v1920_v12  ;;  %v524_v10 = vand.u32 4294901760, %v523_v8  ;;  %v344_v8 = vld [vmem:[%s288_s12] sm:$0x1] }
  0x72   : > { %1441 = vmatpush.msk.msrb.mxu2 %vm408_vm6, %v2990_v50  ;;  %941 = vmatpush.msrb.mxu3 %v940_v4  ;;  %v2665_v62 = vsub.f32 %v485_v63, %v2638_v45  ;;  %v3010_v55 = vand.u32 4294901760, %v2207_v57  ;;  %v958_v13 = vand.u32 4294901760, %v957_v9  ;;  %v3012_v4 = vand.u32 4294901760, %v2236_v24 }
  0x73   : > { %1423 = vmatpush.msk.msrb.mxu1 %vm3005_vm5, %v2990_v50  ;;  %774 = vmatpush.msrb.mxu0 %v3006_v37  ;;  %vm3011_vm5 = vcmp.eq.s32.totalorder %v1926_v14, %v1920_v12  ;;  %v963_v57 = vsub.f32 %v2627_v47, %v962_v46  ;;  %v3016_v24 = vand.u32 4294901760, %v2269_v0  ;;  %v3031_v22 = vand.u32 4294901760, %v2428_v38 }
  0x74   : > { %1442 = vmatpush.msk.msrb.mxu2 %vm407_vm12, %v2990_v50  ;;  %947 = vmatpush.msrb.mxu3 %v946_v5  ;;  %v863_v14 = vand.u32 4294901760, %v2665_v62  ;;  %v1170_v28 = vadd.f32 0.0001, %v345_v43 }
  0x75   : > { %1424 = vmatpush.msk.msrb.mxu1 %vm3007_vm3, %v2990_v50  ;;  %778 = vmatpush.msrb.mxu0 %v3008_v33  ;;  %vm3013_vm3 = vcmp.eq.s32.totalorder %v1929_v15, %v1920_v12  ;;  %v964_v15 = vand.u32 4294901760, %v963_v57 }
  0x76   : > { %1443 = vmatpush.msk.msrb.mxu2 %vm406_vm9, %v2990_v50  ;;  %953 = vmatpush.msrb.mxu3 %v952_v56  ;;  %1560 = vrcp.f32 %v1170_v28 }
  0x77   : > { %1425 = vmatpush.msk.msrb.mxu1 %vm3009_vm4, %v2990_v50  ;;  %782 = vmatpush.msrb.mxu0 %v3010_v55  ;;  %vm3014_vm4 = vcmp.eq.s32.totalorder %v1932_v16, %v1920_v12  ;;  %v864_v16 = vsub.f32 %v2665_v62, %v863_v14 }
  0x78   : > { %1444 = vmatpush.msk.msrb.mxu2 %vm405_vm8, %v2990_v50  ;;  %525 = vmatmul.f32.vlgmr.msra.gmra.mxu0 %v524_v10 }
  0x79   : > { %1426 = vmatpush.msk.msrb.mxu1 %vm3011_vm5, %v2990_v50  ;;  %786 = vmatpush.msrb.mxu0 %v3012_v4  ;;  %vm3015_vm5 = vcmp.eq.s32.totalorder %v1935_v17, %v1920_v12  ;;  %v3018_v17 = vand.u32 4294901760, %v2293_v48  ;;  %v865_v52 = vand.u32 4294901760, %v864_v16 }
  0x7a   : > { %1445 = vmatpush.msk.msrb.mxu2 %vm404_vm0, %v2990_v50  ;;  %959 = vmatpush.msrb.mxu3 %v958_v13 }
  0x7b   : > { %1427 = vmatpush.msk.msrb.mxu1 %vm3013_vm3, %v2990_v50  ;;  %973 = vmatpush.msra.mxu0 %v2269_v0  ;;  %vm3017_vm3 = vcmp.eq.s32.totalorder %v1938_v18, %v1920_v12  ;;  %v3022_v18 = vand.u32 4294901760, %v2318_v61  ;;  %v3032_v0 = vand.u32 4294901760, %v2453_v21 }
  0x7c   : > { %1446 = vmatpush.msk.msrb.mxu2 %vm403_vm1, %v2990_v50  ;;  %719 = vmatmul.f32.vlgmr.msra.gmra.mxu3 %v522_v6  ;;  %v1561_v40 = vpop.eup %1560 }
  0x7d   : > { %1428 = vmatpush.msk.msrb.mxu1 %vm3014_vm4, %v2990_v50  ;;  %976 = vmatpush.msra.mxu0 %v2293_v48  ;;  %vm3019_vm4 = vcmp.eq.s32.totalorder %v1941_v19, %v1920_v12  ;;  %v3024_v48 = vld [vmem:[#allocation12_spill] sm:$0xff]  ;;  %v3027_v19 = vld [vmem:[#allocation13_spill] sm:$0xff] }
  0x7e   : > { %1447 = vmatpush.msk.msrb.mxu2 %vm2983_vm2, %v2990_v50  ;;  %965 = vmatpush.msrb.mxu3 %v964_v15  ;;  %vm3023_vm2 = vcmp.eq.s32.totalorder %v2000_v30, %v1920_v12  ;;  %v3028_v30 = vand.u32 4294901760, %v2357_v54  ;;  %v3030_v49 = vand.u32 4294901760, %v3027_v19 }
  0x7f   : > { %1429 = vmatpush.msk.msrb.mxu1 %vm3015_vm5, %v2990_v50  ;;  %979 = vmatpush.msra.mxu0 %v2318_v61  ;;  %vm3020_vm5 = vcmp.eq.s32.totalorder %v1889_v1, %v1920_v12  ;;  %v3026_v1 = vand.u32 4294901760, %v2332_v29 }
  0x80   : > { %1067 = vmatpush.msra.mxu2 %v3016_v24  ;;  %626 = vmatmul.f32.vlgmr.msra.gmra.mxu1 %v2513_v20 }
  0x81   : > { %1430 = vmatpush.msk.msrb.mxu1 %vm3017_vm3, %v2990_v50  ;;  %982 = vmatpush.msra.mxu0 %v2332_v29  ;;  %vm3021_vm3 = vmmov %vm3019_vm4  ;;  %v3029_v29 = vand.u32 4294901760, %v3024_v48 }
  0x82   : > { %1071 = vmatpush.msra.mxu2 %v3018_v17  ;;  %1464 = vmatpush.msk.msra.mxu3 %vm3019_vm4, %v2990_v50  ;;  %vm3025_vm4 = vmmov %vm3023_vm2 }
  0x83   : > { %1431 = vmatpush.msk.msrb.mxu1 %vm3020_vm5, %v2990_v50  ;;  %985 = vmatpush.msra.mxu0 %v2357_v54 }
  0x84   : > { %1075 = vmatpush.msra.mxu2 %v3022_v18  ;;  %1465 = vmatpush.msk.msra.mxu3 %vm3023_vm2, %v2990_v50  ;;  %vm1207_vm2 = vcmask 0  }
  0x85   : > { %1448 = vmatpush.msk.msra.mxu1 %vm3021_vm3, %v2990_v50  ;;  %988 = vmatpush.msra.mxu0 %v3024_v48 }
  0x86   : > { %866 = vmatmul.f32.vlgmr.msrb.gmra.mxu2 %v865_v52  ;;  %1466 = vmatpush.msk.msra.mxu3 %vm415_vm11, %v2990_v50 }
  0x87   : > { %1449 = vmatpush.msk.msra.mxu1 %vm3025_vm4, %v2990_v50  ;;  %1079 = vmatpush.msra.mxu2 %v3026_v1 }
  0x88   : > { %991 = vmatpush.msra.mxu0 %v3027_v19  ;;  %967 = vmatmul.f32.vlgmr.msrb.gmra.mxu3 %v2638_v45 }
  0x89   : > { %788 = vmatmul.f32.vlgmr.msrb.gmra.mxu0 %v2513_v20  ;;  %1450 = vmatpush.msk.msra.mxu1 %vm415_vm11, %v2990_v50 }
  0x8a   : > { %1083 = vmatpush.msra.mxu2 %v3028_v30  ;;  %1467 = vmatpush.msk.msra.mxu3 %vm414_vm10, %v2990_v50 }
  0x8b   : > { %994 = vmatpush.msra.mxu0 %v2428_v38  ;;  %825 = vmatmul.f32.vlgmr.msrb.gmra.mxu1 %v2513_v20  ;;  %v3034_v38 = vand.u32 4294901760, %v2478_v53  ;;  %v343_v20 = vld [vmem:[%s279_s9] sm:$0x1] }
  0x8c   : > { %1087 = vmatpush.msra.mxu2 %v3029_v29  ;;  %1451 = vmatpush.msk.msra.mxu1 %vm414_vm10, %v2990_v50  ;;  %vm3033_vm10 = vcmp.eq.s32.totalorder %v2378_v41, %v1920_v12 }
  0x8d   : > { %1468 = vmatpush.msk.msra.mxu3 %vm413_vm13, %v2990_v50  ;;  %997 = vmatpush.msra.mxu0 %v2453_v21  ;;  %vm3035_vm11 = vmmov %vm3033_vm10  ;;  %v3036_v21 = vand.u32 4294901760, %v2488_v35 }
  0x8e   : > { %1091 = vmatpush.msra.mxu2 %v3030_v49  ;;  %1452 = vmatpush.msk.msra.mxu1 %vm413_vm13, %v2990_v50  ;;  %vm350_vm13 = vcmp.lt.s32.totalorder %v343_v20, 256 }
  0x8f   : > { %1469 = vmatpush.msk.msra.mxu3 %vm412_vm14, %v2990_v50  ;;  %1000 = vmatpush.msra.mxu0 %v2478_v53 }
  0x90   : > { %1095 = vmatpush.msra.mxu2 %v3031_v22  ;;  %1453 = vmatpush.msk.msra.mxu1 %vm412_vm14, %v2990_v50 }
  0x91   : > { %1470 = vmatpush.msk.msra.mxu3 %vm411_vm15, %v2990_v50  ;;  %1003 = vmatpush.msra.mxu0 %v2488_v35 }
  0x92   : > { %1099 = vmatpush.msra.mxu2 %v3032_v0  ;;  %1454 = vmatpush.msk.msra.mxu1 %vm411_vm15, %v2990_v50 }
  0x93   : > { %1471 = vmatpush.msk.msra.mxu3 %vm3033_vm10, %v2990_v50  ;;  %1006 = vmatpush.msra.mxu0 %v2502_v60 }
  0x94   : > { %1103 = vmatpush.msra.mxu2 %v3034_v38  ;;  %1455 = vmatpush.msk.msra.mxu1 %vm3035_vm11, %v2990_v50 }
  0x95   : > { %1472 = vmatpush.msk.msra.mxu3 %vm409_vm7, %v2990_v50  ;;  %1009 = vmatpush.msra.mxu0 %v2528_v42 }
  0x96   : > { %1107 = vmatpush.msra.mxu2 %v3036_v21  ;;  %1456 = vmatpush.msk.msra.mxu1 %vm409_vm7, %v2990_v50 }
  0x97   : > { %1473 = vmatpush.msk.msra.mxu3 %vm408_vm6, %v2990_v50  ;;  %1012 = vmatpush.msra.mxu0 %v2566_v2 }
  0x98   : > { %1111 = vmatpush.msra.mxu2 %v938_v59  ;;  %1457 = vmatpush.msk.msra.mxu1 %vm408_vm6, %v2990_v50  ;;  %vm3037_vm6 = vcmp.eq.s32.totalorder %v2574_v39, %v1920_v12  ;;  %v1172_v12 = vmul.f32 %v1561_v40, %v1170_v28  ;;  %v1182_v39 = vand.u32 2147483648, %v1170_v28 }
  0x99   : > { %1474 = vmatpush.msk.msra.mxu3 %vm407_vm12, %v2990_v50  ;;  %1015 = vmatpush.msra.mxu0 %v2589_v25  ;;  %vm3038_vm7 = vmmov %vm3037_vm6  ;;  %v1180_v25 = vand.u32 2147483647, %v1170_v28 }
  0x9a   : > { %1115 = vmatpush.msra.mxu2 %v944_v3  ;;  %1458 = vmatpush.msk.msra.mxu1 %vm407_vm12, %v2990_v50  ;;  %v1173_v60 = vsub.f32 1.0, %v1172_v12  ;;  %vm349_vm12 = vcmp.ge.s32.totalorder %v343_v20, 0  ;;  %v1183_v36 = vor.u32 1.1754944e-38, %v1182_v39 }
  0x9b   : > { %1475 = vmatpush.msk.msra.mxu3 %vm406_vm9, %v2990_v50  ;;  %1018 = vmatpush.msra.mxu0 %v2627_v47  ;;  %vm351_vm15 = vmand %vm349_vm12, %vm350_vm13 }
  0x9c   : > { %1119 = vmatpush.msra.mxu2 %v950_v58  ;;  %1021 = vmatmul.f32.vlgmr.msra.gmra.mxu0 %v2665_v62  ;;  %v1174_v44 = vmul.f32 %v1561_v40, %v1173_v60 }
  0x9d   : > { %1459 = vmatpush.msk.msra.mxu1 %vm406_vm9, %v2990_v50  ;;  %1476 = vmatpush.msk.msra.mxu3 %vm405_vm8, %v2990_v50  ;;  %vm1177_vm9 = vweird.f32 %v1561_v40 }
  0x9e   : > { %1123 = vmatpush.msra.mxu2 %v956_v23  ;;  %v1175_v58 = vadd.f32 %v1561_v40, %v1174_v44 }
  0x9f   : > { %1460 = vmatpush.msk.msra.mxu1 %vm405_vm8, %v2990_v50  ;;  %1477 = vmatpush.msk.msra.mxu3 %vm404_vm0, %v2990_v50  ;;  %vm1176_vm8 = vweird.f32 %v1170_v28 }
  0xa0   : > { %1127 = vmatpush.msra.mxu2 %v962_v46  ;;  %vm1178_vm14 = vmor %vm1176_vm8, %vm1177_vm9 }
  0xa1   : > { %1461 = vmatpush.msk.msra.mxu1 %vm404_vm0, %v2990_v50  ;;  %1129 = vmatmul.f32.vlgmr.msra.gmra.mxu2 %v2638_v45  ;;  %v1179_v5 = vsel %vm1178_vm14, %v1561_v40, %v1175_v58  ;;  %vm1181_vm0 = vcmp.eq.f32.partialorder %v1180_v25, 8.507059e+37 }
  0xa2   : > { %1478 = vmatpush.msk.msra.mxu3 %vm403_vm1, %v2990_v50  ;;  %v1184_v56 = vsel %vm1181_vm0, %v1183_v36, %v1179_v5 }
  0xa3   : > { %1462 = vmatpush.msk.msra.mxu1 %vm403_vm1, %v2990_v50  ;;  %vm1195_vm1 = vcmask 60416  }
  0xa4   : > { %1479 = vmatpush.msk.msra.mxu3 %vm3037_vm6, %v2990_v50 }
  0xa5   : > { %1166 = vmatmul.f32.vlgmr.msra.gmra.mxu3 %v2638_v45  ;;  %1463 = vmatpush.msk.msra.mxu1 %vm3038_vm7, %v2990_v50  ;;  %v1480_v45 = vsel %vm351_vm15, 1.0, %v2993_v51 }
  0xa6   : > { %1060 = vmatmul.f32.vlgmr.msra.gmra.mxu1 %v863_v14  ;;  %v1188_v33 = vmul.f32 %v1480_v45, %v344_v8 }
  0xa8   : > { %v1192_v62 = vperm.slane %v1188_v33, 0 }
  0xef   : > { %v681_v54 = vpop.f32.mrf.mxu2 }
  0xf5   : > { %v526_v11 = vpop.f32.mrf.mxu0 }
  0xfd   : > { %v627_v41 = vpop.f32.mrf.mxu1 }
  0xfe   : > { %v628_v61 = vadd.f32 %v627_v41, %v526_v11 }
  0xff   : > { %v720_v59 = vpop.f32.mrf.mxu3 }
 0x100   : > { %v682_v31 = vadd.f32 %v681_v54, %v628_v61 }
 0x102   : > { %v721_v53 = vadd.f32 %v720_v59, %v682_v31 }
 0x106   : > { %v789_v32 = vpop.f32.mrf.mxu0 }
 0x107   : > { %v790_v34 = vadd.f32 %v789_v32, %v721_v53 }
 0x108   : > { %v826_v27 = vpop.f32.mrf.mxu1 }
 0x109   : > { %v827_v50 = vadd.f32 %v826_v27, %v790_v34  ;;  %v867_v35 = vpop.f32.mrf.mxu2 }
 0x10b   : > { %v868_v42 = vadd.f32 %v867_v35, %v827_v50  ;;  %v968_v26 = vpop.f32.mrf.mxu3 }
 0x10d   : > { %v969_v2 = vadd.f32 %v968_v26, %v868_v42 }
 0x119   : > { %v1022_v3 = vpop.f32.mrf.mxu0 }
 0x11a   : > { %v1023_v6 = vadd.f32 %v1022_v3, %v969_v2 }
 0x123   : > { %v1061_v7 = vpop.f32.mrf.mxu1 }
 0x124   : > { %v1062_v63 = vadd.f32 %v1061_v7, %v1023_v6  ;;  %v1130_v23 = vpop.f32.mrf.mxu2 }
 0x126   : > { %v1131_v47 = vadd.f32 %v1130_v23, %v1062_v63 }
 0x128   : > { %v1167_v37 = vpop.f32.mrf.mxu3 }
 0x129   : > { %v1168_v9 = vadd.f32 %v1167_v37, %v1131_v47 }
 0x12b   : > { %v1185_v46 = vmul.f32 %v1184_v56, %v1168_v9 }
 0x12d   : > { %v1481_v10 = vadd.f32 -1.0, %v1185_v46 }
 0x12f   : > { %v1190_v55 = vand.u32 2147483647, %v1481_v10 }
 0x131   : > { %v1194_v13 = vmul.f32 %v1192_v62, %v1190_v55 }
 0x133   : > { %v1196_v4 = vsel %vm1195_vm1, %v1194_v13, 0.0 }
 0x134   : > { %1197 = vadd.xlane.f32.xlu0 %v1196_v4 }
 0x1a7   : > { %v1198_v57 = vpop.xlane.xlu0 %1197 }
 0x1a8   : > { %v1199_v14 = vrot.slane %v1198_v57, 4 }
 0x1aa   : > { %v1200_v15 = vadd.f32 %v1199_v14, %v1198_v57 }
 0x1ac   : > { %v1201_v16 = vrot.slane %v1200_v15, 2 }
 0x1ae   : > { %v1202_v24 = vadd.f32 %v1201_v16, %v1200_v15 }
 0x1b0   : > { %v1203_v51 = vrot.slane %v1202_v24, 1 }
 0x1b2   : > { %v1204_v17 = vadd.f32 %v1203_v51, %v1202_v24 }
 0x1b4   : > { %1485 = vpush %v1204_v17 }
 0x1e5   : > { %s1486_s30 = spop %1485 }
 0x1e6   : > { %v1206_v52 = vstv %s1486_s30 }
 0x1e7   : > { %1208 = vst.msk [vmem:[%s340_s24] sm:$0x1] %vm1207_vm2, %v1206_v52 }
 0x1e8 PF: > { %s23_s20 = sadd.s32 1, %s1740_s20   ;;  %s3039_s15 = smov %s1724_s16 }
 0x1e9   : > { %p20_p0 = scmp.ge.s32.totalorder %s23_s20, 4   ;;  %s3040_s16 = smov %s1728_s17 }
 0x1ea   : > { %s3041_s17 = smov %s1816_s26  ;;  %s3042_s18 = smov %s1736_s19 }
 0x1eb   : > { %s3043_s19 = smov %s3045_s22  ;;  %22 = sbr.rel (!%p20_p0) target bundleno = 8 (0x8), region = 113 }
 0x1f0   :  { %1229 = vsyncpa [#allocation3], 1 }
 0x1f1   :  { %1231 = vsyncpa [#allocation3 + $0x1], 1 }
 0x1f2   :  { %1232 = vsyncpa [#allocation5], 1 }
 0x1f3   :  { %1234 = vsyncpa [#allocation5 + $0x1], 1 }
 0x1f4   :  { %1235 = vsyncpa [#allocation8], 1 }
 0x1f5   :  { %1237 = vsyncpa [#allocation8 + $0x1], 1 }

</bundles_post_ra>
